<compile_context>
chip_gen: v5e
topology: v5e:2x2
jax: 0.10.0
libtpu: 0.0.40
codegen_flags: <defaults>
</compile_context>

<pallas_src>
import jax
import jax.numpy as jnp
import numpy as np
from jax import lax
from jax.experimental import pallas as pl
from jax.experimental.pallas import tpu as pltpu

LANE = 128


def _round_up(a: int, b: int) -> int:
    return ((a + b - 1) // b) * b


def _classify_q(q: float, tol: float = 1e-6, max_int: int = 64):
    """Pick the cheapest evaluation path for a static exponent q.

    ("int", k)   : |x|^k via memoized VPU multiply chain (no EUP).
    ("half", k)  : |x|^(k+0.5) = sqrt(|x|) * |x|^k (one shared EUP sqrt).
    ("other", q) : exp(q * log|x|) (one shared log + one exp per such q).
    """
    r = round(q)
    if abs(q - r) <= tol and 0 <= r <= max_int:
        return ("int", int(r))
    rh = round(q - 0.5)
    if abs(q - 0.5 - rh) <= tol and 0 <= rh <= max_int:
        return ("half", int(rh))
    return ("other", float(q))


def _make_scat_kernel(specs, T: int, tk: int, inv_t: float):
    needs_abs = any((kind != "int") or (k % 2 == 1) for kind, k in specs)
    needs_sqrt = any(kind == "half" for kind, _ in specs)
    needs_log = any(kind == "other" for kind, _ in specs)
    ragged_t = (T % tk) != 0
    inv_t = float(inv_t)

    def kernel(x_ref, o_ref, acc_ref):
        # x_ref: (tm, tk) input tile; o_ref / acc_ref: (Q, tm), lane-dense.
        t = pl.program_id(1)

        @pl.when(t == 0)
        def _():
            acc_ref[...] = jnp.zeros_like(acc_ref)

        x = x_ref[...].astype(jnp.float32)
        ax = jnp.abs(x) if needs_abs else x        # skipped for all-even-int qs

        if ragged_t:
            # Mask the undefined tail of the last T block before summing.
            lane = lax.broadcasted_iota(jnp.int32, ax.shape, 1)
            valid = (t * tk + lane) < T

        cache = {}

        def ipow(n: int):
            # Memoized |x|^n via exponentiation-by-squaring (VPU mults only).
            if n == 0:
                return jnp.ones_like(ax)
            if n in cache:
                return cache[n]
            if n == 1:
                r = ax
            else:
                h = ipow(n // 2)
                r = h * h
                if n % 2:
                    r = r * ax
            cache[n] = r
            return r

        sx = jnp.sqrt(ax) if needs_sqrt else None   # one shared EUP sqrt
        # x == 0 with an "other" q: log(0) = -inf, exp(q*-inf) = 0 for q > 0
        # (inf for q < 0) -- matches torch's |x|**q for this forward pass.
        lx = jnp.log(ax) if needs_log else None     # one shared EUP log

        partials = []
        for kind, k in specs:
            if kind == "int":
                p = ipow(k)
            elif kind == "half":
                p = sx if k == 0 else sx * ipow(k)
            else:
                p = jnp.exp(jnp.float32(k) * lx)    # one EUP exp per such q
            if ragged_t:
                p = jnp.where(valid, p, 0.0)
            partials.append(jnp.sum(p, axis=-1))    # (tm,) cross-lane reduce
        acc_ref[...] += jnp.stack(partials, axis=0)  # (Q, tm)

        @pl.when(t == pl.num_programs(1) - 1)
        def _():
            o_ref[...] = acc_ref[...] * jnp.float32(inv_t)

    return kernel


def scat_coefficients(x, qs, *, target_tile_elems=512 * 1024, tk_max=2048):
    """E[|x|^q] over the last axis.

    x : (B, N, J, A, T) array (any float dtype; DMA'd in native dtype).
    qs: static sequence of exponents (the module's `qs` buffer).
    Returns (B, N, J, A, len(qs), 1) float32.
    """
    qs = [float(q) for q in np.asarray(qs).reshape(-1).tolist()]
    specs = [_classify_q(q) for q in qs]
    Q = len(qs)
    B, N, J, A, T = x.shape
    M = B * N * J * A
    xf = jnp.reshape(x, (M, T))      # free reshape, native dtype kept

    # Reduction (lane) tile: full T when it fits, else tk_max-wide chunks
    # accumulated in-kernel -- bounds the tile for any T.
    tk = T if T <= tk_max else tk_max
    grid_t = pl.cdiv(T, tk)

    # Row tile: multiple of 128 (lane-dense (Q, tm) output), sized so each
    # f32 full-tile temporary is ~target_tile_elems * 4 bytes, and capped so
    # the parallel row axis has >= ~8 steps (megacore + pipeline depth).
    tm = max(LANE, (max(1, target_tile_elems // tk) // LANE) * LANE)
    tm = min(tm, 4096)
    tm = min(tm, max(LANE, _round_up(pl.cdiv(M, 8), LANE)))
    if tm >= M:
        tm = M                       # full-dim block; no padding needed
    grid_m = pl.cdiv(M, tm)          # ragged last block: OOB rows discarded

    kernel = _make_scat_kernel(specs, T, tk, 1.0 / T)

    n_other = sum(1 for kind, _ in specs if kind == "other")
    n_trans = ((1 if any(kind == "half" for kind, _ in specs) else 0)
               + (1 if n_other else 0) + n_other)
    cost = pl.CostEstimate(
        flops=int(M) * int(T) * (2 + 3 * Q),
        transcendentals=int(M) * int(T) * n_trans,
        bytes_accessed=int(M) * int(T) * x.dtype.itemsize + Q * int(M) * 4,
    )

    out = pl.pallas_call(
        kernel,
        out_shape=jax.ShapeDtypeStruct((Q, M), jnp.float32),
        grid_spec=pltpu.PrefetchScalarGridSpec(
            num_scalar_prefetch=0,
            grid=(grid_m, grid_t),
            in_specs=[pl.BlockSpec((tm, tk), lambda i, t: (i, t))],
            out_specs=pl.BlockSpec((Q, tm), lambda i, t: (0, i)),
            scratch_shapes=[pltpu.VMEM((Q, tm), jnp.float32)],
        ),
        compiler_params=pltpu.CompilerParams(
            dimension_semantics=("parallel", "arbitrary"),
            # Per-step footprint is bounded (~8-16 MiB) by construction, so a
            # 32 MiB cap is safe on v5e/v6e (128 MiB) and v7x (64 MiB).
            vmem_limit_bytes=32 * 1024 * 1024,
        ),
        cost_estimate=cost,
    )(xf)

    out = jnp.transpose(out, (1, 0))              # (M, Q)
    return out.reshape(B, N, J, A, Q)[..., None]  # (B, N, J, A, Q, 1)


def _reference(x, qs):
    qs_arr = jnp.array(qs, dtype=jnp.float32)
    return jnp.mean(jnp.abs(x.astype(jnp.float32))[..., None, :]
                    ** qs_arr[:, None], axis=-1, keepdims=True)


if __name__ == "__main__":
    key = jax.random.PRNGKey(0)
    k1, k2 = jax.random.split(key)

    # Test 1: small B x N x js x A x T, mixed integer / half-integer qs
    # (exercises the no-EUP multiply-chain path + shared sqrt path).
    B, N, J, A, T = 2, 4, 3, 2, 128
    x1 = jax.random.normal(k1, (B, N, J, A, T), dtype=jnp.float32)
    qs1 = [0.5, 1.0, 2.0, 2.5, 4.0]
    out1 = jax.block_until_ready(scat_coefficients(x1, qs1))
    ref1 = _reference(x1, qs1)
    assert out1.shape == (B, N, J, A, len(qs1), 1), out1.shape
    assert jnp.allclose(out1, ref1, rtol=1e-4, atol=1e-5), float(
        jnp.max(jnp.abs(out1 - ref1)))

    # Test 2: ragged row blocks (M=130), T-axis tiling with a ragged last T
    # block (tk_max=128, T=300), plus the generic log/exp path (q=1.7).
    B2, N2, J2, A2, T2 = 2, 5, 13, 1, 300
    x2 = jax.random.normal(k2, (B2, N2, J2, A2, T2), dtype=jnp.float32)
    qs2 = [1.7, 3.0]
    out2 = jax.block_until_ready(scat_coefficients(x2, qs2, tk_max=128))
    ref2 = _reference(x2, qs2)
    assert out2.shape == (B2, N2, J2, A2, len(qs2), 1), out2.shape
    assert jnp.allclose(out2, ref2, rtol=1e-4, atol=1e-5), float(
        jnp.max(jnp.abs(out2 - ref2)))

    print("KERNEL_OK")
</pallas_src>

<mosaic_0001>
module attributes {stable_mosaic.version = 11 : i64} {
  func.func @kernel(%arg0: i32, %arg1: i32, %arg2: memref<48x128xf32, #tpu.memory_space<vmem>>, %arg3: memref<5x48xf32, #tpu.memory_space<vmem>>, %arg4: memref<5x48xf32, #tpu.memory_space<vmem>>) attributes {dimension_semantics = [#tpu.dimension_semantics<parallel>, #tpu.dimension_semantics<arbitrary>], iteration_bounds = array<i64: 1, 1>, scalar_prefetch = 0 : i64, scratch_operands = 1 : i64, tpu.core_type = #tpu.core_type<tc>, window_params = [{transform_indices = @transform_0, window_bounds = array<i64: 48, 128>}, {transform_indices = @transform_1, window_bounds = array<i64: 5, 48>}]} {
    %c0_i32 = arith.constant 0 : i32
    %0 = arith.cmpi eq, %arg1, %c0_i32 : i32
    %1 = arith.extui %0 : i1 to i32
    %c0_i32_0 = arith.constant 0 : i32
    %2 = arith.cmpi ne, %1, %c0_i32_0 : i32
    scf.if %2 {
      %cst_12 = arith.constant 0.000000e+00 : f32
      %26 = vector.broadcast %cst_12 : f32 to vector<5x48xf32>
      %c0_13 = arith.constant 0 : index
      %c0_14 = arith.constant 0 : index
      %27 = vector.load %arg4[%c0_13, %c0_14] : memref<5x48xf32, #tpu.memory_space<vmem>>, vector<5x48xf32>
      tpu.vector_store %arg4[%c0_13, %c0_14], %26 {strides = array<i32>} : memref<5x48xf32, #tpu.memory_space<vmem>>, vector<5x48xf32>,
    } else {
    }
    %c0 = arith.constant 0 : index
    %c0_1 = arith.constant 0 : index
    %3 = vector.load %arg2[%c0, %c0_1] : memref<48x128xf32, #tpu.memory_space<vmem>>, vector<48x128xf32>
    %4 = math.absf %3 : vector<48x128xf32>
    %5 = math.sqrt %4 : vector<48x128xf32>
    %cst = arith.constant dense<0.000000e+00> : vector<48xf32>
    %6 = vector.multi_reduction <add>, %5, %cst [1] : vector<48x128xf32> to vector<48xf32>
    %cst_2 = arith.constant dense<0.000000e+00> : vector<48xf32>
    %7 = vector.multi_reduction <add>, %4, %cst_2 [1] : vector<48x128xf32> to vector<48xf32>
    %8 = arith.mulf %4, %4 : vector<48x128xf32>
    %cst_3 = arith.constant dense<0.000000e+00> : vector<48xf32>
    %9 = vector.multi_reduction <add>, %8, %cst_3 [1] : vector<48x128xf32> to vector<48xf32>
    %10 = arith.mulf %5, %8 : vector<48x128xf32>
    %cst_4 = arith.constant dense<0.000000e+00> : vector<48xf32>
    %11 = vector.multi_reduction <add>, %10, %cst_4 [1] : vector<48x128xf32> to vector<48xf32>
    %12 = arith.mulf %8, %8 : vector<48x128xf32>
    %cst_5 = arith.constant dense<0.000000e+00> : vector<48xf32>
    %13 = vector.multi_reduction <add>, %12, %cst_5 [1] : vector<48x128xf32> to vector<48xf32>
    %c0_6 = arith.constant 0 : index
    %c0_7 = arith.constant 0 : index
    %14 = vector.load %arg4[%c0_6, %c0_7] : memref<5x48xf32, #tpu.memory_space<vmem>>, vector<5x48xf32>
    %15 = vector.shape_cast %6 : vector<48xf32> to vector<1x48xf32>
    %16 = vector.shape_cast %7 : vector<48xf32> to vector<1x48xf32>
    %17 = vector.shape_cast %9 : vector<48xf32> to vector<1x48xf32>
    %18 = vector.shape_cast %11 : vector<48xf32> to vector<1x48xf32>
    %19 = vector.shape_cast %13 : vector<48xf32> to vector<1x48xf32>
    %20 = tpu.concatenate %15, %16, %17, %18, %19 in 0 : vector<1x48xf32>, vector<1x48xf32>, vector<1x48xf32>, vector<1x48xf32>, vector<1x48xf32> -> vector<5x48xf32>
    %21 = arith.addf %14, %20 : vector<5x48xf32>
    %c0_8 = arith.constant 0 : index
    %c0_9 = arith.constant 0 : index
    %22 = vector.load %arg4[%c0_8, %c0_9] : memref<5x48xf32, #tpu.memory_space<vmem>>, vector<5x48xf32>
    tpu.vector_store %arg4[%c0_8, %c0_9], %21 {strides = array<i32>} : memref<5x48xf32, #tpu.memory_space<vmem>>, vector<5x48xf32>,
    %c0_i32_10 = arith.constant 0 : i32
    %23 = arith.cmpi eq, %arg1, %c0_i32_10 : i32
    %24 = arith.extui %23 : i1 to i32
    %c0_i32_11 = arith.constant 0 : i32
    %25 = arith.cmpi ne, %24, %c0_i32_11 : i32
    scf.if %25 {
      %c0_12 = arith.constant 0 : index
      %c0_13 = arith.constant 0 : index
      %26 = vector.load %arg4[%c0_12, %c0_13] : memref<5x48xf32, #tpu.memory_space<vmem>>, vector<5x48xf32>
      %cst_14 = arith.constant 7.812500e-03 : f32
      %27 = vector.broadcast %cst_14 : f32 to vector<5x48xf32>
      %28 = arith.mulf %26, %27 : vector<5x48xf32>
      %c0_15 = arith.constant 0 : index
      %c0_16 = arith.constant 0 : index
      %29 = vector.load %arg3[%c0_15, %c0_16] : memref<5x48xf32, #tpu.memory_space<vmem>>, vector<5x48xf32>
      tpu.vector_store %arg3[%c0_15, %c0_16], %28 {strides = array<i32>} : memref<5x48xf32, #tpu.memory_space<vmem>>, vector<5x48xf32>,
    } else {
    }
    return
  }
  func.func @transform_0(%arg0: i32, %arg1: i32) -> (i32, i32) {
    %c0_i32 = arith.constant 0 : i32
    return %arg0, %arg1 : i32, i32
  }
  func.func @transform_1(%arg0: i32, %arg1: i32) -> (i32, i32) {
    %c0_i32 = arith.constant 0 : i32
    %c0_i32_0 = arith.constant 0 : i32
    return %c0_i32, %arg0 : i32, i32
  }
}

</mosaic_0001>

<bundles_post_ra>
// kernel: tpu_custom_call.1
= control target key start
LH: loop header
LB: loop body
LE: loop exit
PB: predicated region body
PF: predicated region fallthrough
CT: control target
= control target key end

     0   :  { %6 = vsyncpa [#allocation4], 0  ;;  %s584_s0 = inlined_call_operand.hbm [shape: f32[48,128], index: 0, kind: input, shape index: {}]   ;;  %s585_s1 = inlined_call_operand.hbm [shape: f32[5,48], index: 1, kind: output, shape index: {}]  }
   0x1   :  { %7 = vsyncpa [#allocation5], 0  ;;  %s12_s8 = sshll.u32 %s584_s0, 4  ;;  %s399_s9 = smov [#allocation3]   ;;  %s13_s8 = int_to_ptr.hbm [resolvable:$true] %s12_s8 }
   0x2   :  { %s14_s10 = sshll.u32 %s399_s9, 4  ;;  %s400_s11 = smov 128   ;;  %s15_s10 = int_to_ptr.vmem [resolvable:$true] %s14_s10 }
   0x3   :  { %s401_s12 = smov 8  }
   0x4   :  { %20 = dma.hbm_to_vmem [thread:$0]  %s13_s8, 768, %s15_s10, [#allocation4], %s400_s11, %s400_s11, %s401_s12  }
   0x5   :  { %395 = dma.done.wait [#allocation4], 768  }
   0x6   :  { %396 = vsyncadd [#allocation4], 4294966528  ;;  %v33_v0 = vld [vmem:[#allocation3 + $0x10] sm:$0xff]  ;;  %v32_v1 = vld [vmem:[#allocation3 + $0x8] sm:$0xff]  ;;  %vm205_vm12 = vcmask 130112   ;;  %vm209_vm13 = vcmask 195712  }
   0x7   :  { %v31_v2 = vld [vmem:[#allocation3] sm:$0xff]  ;;  %v417_v3 = vand.u32 2147483647, %v33_v0  ;;  %v419_v4 = vand.u32 2147483647, %v32_v1  ;;  %v34_v6 = vld [vmem:[#allocation3 + $0x18] sm:$0xff] }
   0x8   :  { %v421_v5 = vand.u32 2147483647, %v31_v2  ;;  %v35_v7 = vld [vmem:[#allocation3 + $0x20] sm:$0xff]  ;;  %v425_v8 = vand.u32 2147483647, %v34_v6  ;;  %v36_v10 = vld [vmem:[#allocation3 + $0x28] sm:$0xff] }
   0x9   :  { %131 = vadd.xlane.f32.xlu2 %v417_v3  ;;  %129 = vadd.xlane.f32.xlu1 %v419_v4  ;;  %v427_v9 = vand.u32 2147483647, %v35_v7  ;;  %335 = vrsqrt.f32 %v417_v3  ;;  %v435_v11 = vmul.f32 %v419_v4, %v419_v4  ;;  %v437_v12 = vand.u32 2147483647, %v36_v10  ;;  %s403_s0 = smov [#allocation6]   ;;  %s320_s16 = sshll.u32 %s585_s1, 4  ;;  %s321_s16 = int_to_ptr.hbm [resolvable:$true] %s320_s16 }
   0xa   :  { %127 = vadd.xlane.f32.xlu0 %v421_v5  ;;  %v442_v13 = vmul.f32 %v421_v5, %v421_v5  ;;  %vm74_vm0 = vcmp.eq.f32.partialorder %v417_v3, inf  ;;  %vm76_vm1 = vcmp.eq.f32.partialorder %v417_v3, 0.0  ;;  %v77_v30 = vand.u32 2147483648, %v417_v3  ;;  %s318_s13 = sshll.u32 %s403_s0, 4  ;;  %s319_s13 = int_to_ptr.vmem [resolvable:$true] %s318_s13 }
   0xb   :  { %337 = vrsqrt.f32 %v427_v9  ;;  %vm98_vm2 = vcmp.eq.f32.partialorder %v427_v9, inf  ;;  %vm100_vm3 = vcmp.eq.f32.partialorder %v427_v9, 0.0  ;;  %v101_v39 = vand.u32 2147483648, %v427_v9 }
   0xc   :  { %339 = vrsqrt.f32 %v421_v5  ;;  %vm50_vm4 = vcmp.eq.f32.partialorder %v421_v5, inf  ;;  %vm52_vm5 = vcmp.eq.f32.partialorder %v421_v5, 0.0  ;;  %v53_v50 = vand.u32 2147483648, %v421_v5 }
   0xd   :  { %341 = vrsqrt.f32 %v425_v8  ;;  %vm86_vm6 = vcmp.eq.f32.partialorder %v425_v8, inf  ;;  %vm110_vm7 = vcmp.eq.f32.partialorder %v437_v12, inf  ;;  %v89_v1 = vand.u32 2147483648, %v425_v8 }
   0xe   :  { %343 = vrsqrt.f32 %v419_v4  ;;  %vm62_vm8 = vcmp.eq.f32.partialorder %v419_v4, inf  ;;  %v113_v2 = vand.u32 2147483648, %v437_v12  ;;  %vm88_vm9 = vcmp.eq.f32.partialorder %v425_v8, 0.0 }
   0xf   :  { %345 = vrsqrt.f32 %v437_v12  ;;  %v336_v14 = vpop.eup %335  ;;  %vm112_vm10 = vcmp.eq.f32.partialorder %v437_v12, 0.0  ;;  %vm64_vm11 = vcmp.eq.f32.partialorder %v419_v4, 0.0  ;;  %vm29_vm14 = vcmask 389120  }
  0x10   :  { %v68_v16 = vmul.f32 %v336_v14, %v417_v3  ;;  %vm213_vm15 = vcmask 261312  }
  0x11   :  { %v338_v15 = vpop.eup %337  ;;  %133 = vadd.xlane.f32.xlu2 %v425_v8  ;;  %147 = vadd.xlane.f32.xlu1 %v435_v11 }
  0x12   :  { %v340_v17 = vpop.eup %339  ;;  %145 = vadd.xlane.f32.xlu0 %v442_v13  ;;  %v92_v18 = vmul.f32 %v338_v15, %v427_v9  ;;  %v69_v20 = vmul.f32 %v336_v14, %v68_v16 }
  0x13   :  { %v342_v19 = vpop.eup %341  ;;  %v44_v21 = vmul.f32 %v340_v17, %v421_v5 }
  0x14   :  { %v344_v22 = vpop.eup %343  ;;  %v93_v23 = vmul.f32 %v338_v15, %v92_v18  ;;  %v80_v24 = vmul.f32 %v342_v19, %v425_v8  ;;  %v70_v26 = vmul.f32 0.5, %v69_v20  ;;  %v142_v20 = vmul.f32 %v425_v8, %v425_v8 }
  0x15   :  { %v346_v25 = vpop.eup %345  ;;  %v45_v27 = vmul.f32 %v340_v17, %v44_v21  ;;  %v56_v28 = vmul.f32 %v344_v22, %v419_v4  ;;  %v176_v21 = vmul.f32 %v435_v11, %v435_v11 }
  0x16   :  { %v94_v29 = vmul.f32 0.5, %v93_v23  ;;  %v104_v31 = vmul.f32 %v346_v25, %v437_v12  ;;  %v81_v32 = vmul.f32 %v342_v19, %v80_v24  ;;  %v71_v33 = vsub.f32 1.5, %v70_v26 }
  0x17   :  { %v46_v34 = vmul.f32 0.5, %v45_v27  ;;  %v57_v35 = vmul.f32 %v344_v22, %v56_v28  ;;  %v200_v28 = vlaneseq }
  0x18   :  { %v95_v36 = vsub.f32 1.5, %v94_v29  ;;  %v105_v37 = vmul.f32 %v346_v25, %v104_v31  ;;  %v82_v38 = vmul.f32 0.5, %v81_v32  ;;  %v72_v40 = vmul.f32 %v336_v14, %v71_v33 }
  0x19   :  { %v47_v41 = vsub.f32 1.5, %v46_v34  ;;  %v58_v42 = vmul.f32 0.5, %v57_v35  ;;  %v515_v29 = vand.u32 127, %v200_v28 }
  0x1a   :  { %v96_v43 = vmul.f32 %v338_v15, %v95_v36  ;;  %v106_v44 = vmul.f32 0.5, %v105_v37  ;;  %v83_v45 = vsub.f32 1.5, %v82_v38  ;;  %v73_v46 = vmul.f32 %v72_v40, %v417_v3 }
  0x1b   :  { %v48_v47 = vmul.f32 %v340_v17, %v47_v41  ;;  %v59_v48 = vsub.f32 1.5, %v58_v42 }
  0x1c   :  { %v97_v49 = vmul.f32 %v96_v43, %v427_v9  ;;  %v107_v51 = vsub.f32 1.5, %v106_v44  ;;  %v84_v52 = vmul.f32 %v342_v19, %v83_v45  ;;  %v75_v53 = vsel %vm74_vm0, %v417_v3, %v73_v46 }
  0x1d   :  { %v49_v54 = vmul.f32 %v48_v47, %v421_v5  ;;  %v60_v55 = vmul.f32 %v344_v22, %v59_v48  ;;  %v78_v57 = vsel %vm76_vm1, %v77_v30, %v75_v53  ;;  %v141_v19 = vmul.f32 %v417_v3, %v417_v3 }
  0x1e   :  { %v99_v56 = vsel %vm98_vm2, %v427_v9, %v97_v49  ;;  %v108_v58 = vmul.f32 %v346_v25, %v107_v51  ;;  %v85_v59 = vmul.f32 %v84_v52, %v425_v8  ;;  %119 = vadd.xlane.f32.xlu1 %v78_v57  ;;  %v175_v22 = vmul.f32 %v442_v13, %v442_v13 }
  0x1f   :  { %v102_v60 = vsel %vm100_vm3, %v101_v39, %v99_v56  ;;  %v51_v61 = vsel %vm50_vm4, %v421_v5, %v49_v54  ;;  %v61_v62 = vmul.f32 %v60_v55, %v419_v4  ;;  %v65_v5 = vand.u32 2147483648, %v419_v4 }
  0x20   :  { %123 = vadd.xlane.f32.xlu2 %v102_v60  ;;  %v54_v63 = vsel %vm52_vm5, %v53_v50, %v51_v61  ;;  %v109_v0 = vmul.f32 %v108_v58, %v437_v12  ;;  %v87_v6 = vsel %vm86_vm6, %v425_v8, %v85_v59  ;;  %v177_v23 = vmul.f32 %v141_v19, %v141_v19 }
  0x21   :  { %115 = vadd.xlane.f32.xlu0 %v54_v63  ;;  %v63_v10 = vsel %vm62_vm8, %v419_v4, %v61_v62  ;;  %v90_v14 = vsel %vm88_vm9, %v89_v1, %v87_v6  ;;  %v157_v17 = vmul.f32 %v442_v13, %v54_v63  ;;  %v159_v4 = vmul.f32 %v141_v19, %v78_v57 }
  0x22   :  { %v111_v7 = vsel %vm110_vm7, %v437_v12, %v109_v0  ;;  %v66_v16 = vsel %vm64_vm11, %v65_v5, %v63_v10  ;;  %v160_v3 = vmul.f32 %v142_v20, %v90_v14  ;;  %v143_v8 = vmul.f32 %v427_v9, %v427_v9 }
  0x23   :  { %v114_v15 = vsel %vm112_vm10, %v113_v2, %v111_v7  ;;  %v158_v18 = vmul.f32 %v435_v11, %v66_v16  ;;  %v178_v25 = vmul.f32 %v142_v20, %v142_v20  ;;  %v144_v11 = vmul.f32 %v437_v12, %v437_v12 }
  0x24   :  { %v161_v24 = vmul.f32 %v143_v8, %v102_v60  ;;  %v179_v13 = vmul.f32 %v143_v8, %v143_v8  ;;  %v521_v30 = vadd.s32 4294967288, %v515_v29  ;;  %v402_v51 = vmov 0.0  }
  0x25   :  { %v180_v26 = vmul.f32 %v144_v11, %v144_v11  ;;  %v162_v27 = vmul.f32 %v144_v11, %v114_v15  ;;  %30 = vst.msk [vmem:[#allocation2] sm:$0x1f] %vm29_vm14, %v402_v51  ;;  %v211_v61 = vadd.s32 4294967272, %v515_v29  ;;  %v215_v1 = vadd.s32 4294967264, %v515_v29 }
  0x26   :  { %121 = vadd.xlane.f32.xlu1 %v90_v14  ;;  %v538_v2 = vadd.s32 4294967256, %v515_v29  ;;  %vm217_vm0 = vcmask 326912   ;;  %vm221_vm1 = vcmask 392512   ;;  %vm296_vm2 = vcmask 1040384  }
  0x27   :  { %vm298_vm3 = vcmask 1041408   ;;  %vm300_vm4 = vcmask 1042432   ;;  %vm302_vm5 = vcmask 1043456  }
  0x28   :  { %125 = vadd.xlane.f32.xlu2 %v114_v15 }
  0x29   :  { %117 = vadd.xlane.f32.xlu0 %v66_v16 }
  0x2e   :  { %163 = vadd.xlane.f32.xlu1 %v157_v17 }
  0x30   :  { %165 = vadd.xlane.f32.xlu2 %v158_v18 }
  0x31   :  { %149 = vadd.xlane.f32.xlu0 %v141_v19 }
  0x36   :  { %151 = vadd.xlane.f32.xlu1 %v142_v20 }
  0x38   :  { %167 = vadd.xlane.f32.xlu2 %v159_v4 }
  0x39   :  { %135 = vadd.xlane.f32.xlu0 %v427_v9  ;;  %v518_v9 = vadd.s32 4294967280, %v515_v29 }
  0x3e   :  { %183 = vadd.xlane.f32.xlu1 %v176_v21 }
  0x40   :  { %137 = vadd.xlane.f32.xlu2 %v437_v12 }
  0x41   :  { %181 = vadd.xlane.f32.xlu0 %v175_v22 }
  0x46   :  { %169 = vadd.xlane.f32.xlu1 %v160_v3 }
  0x48   :  { %185 = vadd.xlane.f32.xlu2 %v177_v23 }
  0x49   :  { %153 = vadd.xlane.f32.xlu0 %v143_v8 }
  0x4e   :  { %171 = vadd.xlane.f32.xlu1 %v161_v24 }
  0x50   :  { %187 = vadd.xlane.f32.xlu2 %v178_v25 }
  0x51   :  { %155 = vadd.xlane.f32.xlu0 %v144_v11 }
  0x56   :  { %189 = vadd.xlane.f32.xlu1 %v179_v13 }
  0x58   :  { %191 = vadd.xlane.f32.xlu2 %v180_v26 }
  0x59   :  { %173 = vadd.xlane.f32.xlu0 %v162_v27 }
  0x7c   :  { %v132_v31 = vpop.xlane.xlu2 %131  ;;  %v130_v12 = vpop.xlane.xlu1 %129 }
  0x7d   :  { %v233_v32 = vperm.slane %v132_v31, %v518_v9  ;;  %v231_v33 = vperm.slane %v130_v12, %v521_v30  ;;  %v128_v34 = vpop.xlane.xlu0 %127 }
  0x7e   :  { %v230_v35 = vperm.slane %v128_v34, %v515_v29 }
  0x80   :  { %v232_v36 = vsel %vm205_vm12, %v231_v33, %v230_v35 }
  0x81   :  { %v234_v37 = vsel %vm209_vm13, %v233_v32, %v232_v36 }
  0x84   :  { %v148_v38 = vpop.xlane.xlu1 %147  ;;  %v134_v40 = vpop.xlane.xlu2 %133 }
  0x85   :  { %v146_v39 = vpop.xlane.xlu0 %145  ;;  %v235_v7 = vperm.slane %v134_v40, %v211_v61  ;;  %v249_v5 = vperm.slane %v148_v38, %v521_v30 }
  0x86   :  { %v248_v10 = vperm.slane %v146_v39, %v515_v29 }
  0x87   :  { %v236_v19 = vsel %vm213_vm15, %v235_v7, %v234_v37 }
  0x88   :  { %v250_v20 = vsel %vm205_vm12, %v249_v5, %v248_v10 }
  0x91   :  { %v120_v41 = vpop.xlane.xlu1 %119 }
  0x92   :  { %v208_v0 = vperm.slane %v120_v41, %v518_v9 }
  0x93   :  { %v124_v42 = vpop.xlane.xlu2 %123 }
  0x94   :  { %v116_v43 = vpop.xlane.xlu0 %115  ;;  %v216_v17 = vperm.slane %v124_v42, %v215_v1 }
  0x95   :  { %v202_v58 = vperm.slane %v116_v43, %v515_v29 }
  0x99   :  { %v122_v44 = vpop.xlane.xlu1 %121 }
  0x9a   :  { %v212_v14 = vperm.slane %v122_v44, %v211_v61 }
  0x9b   :  { %v126_v45 = vpop.xlane.xlu2 %125 }
  0x9c   :  { %v118_v46 = vpop.xlane.xlu0 %117  ;;  %v220_v4 = vperm.slane %v126_v45, %v538_v2 }
  0x9d   :  { %v204_v57 = vperm.slane %v118_v46, %v521_v30 }
  0x9f   :  { %v206_v62 = vsel %vm205_vm12, %v204_v57, %v202_v58  ;;  %v193_v57 = vld [vmem:[#allocation2] sm:$0x1f] }
  0xa0   :  { %v210_v6 = vsel %vm209_vm13, %v208_v0, %v206_v62 }
  0xa1   :  { %v164_v47 = vpop.xlane.xlu1 %163  ;;  %v214_v15 = vsel %vm213_vm15, %v212_v14, %v210_v6 }
  0xa2   :  { %v266_v23 = vperm.slane %v164_v47, %v515_v29  ;;  %v218_v8 = vsel %vm217_vm0, %v216_v17, %v214_v15 }
  0xa3   :  { %v166_v48 = vpop.xlane.xlu2 %165  ;;  %v222_v12 = vsel %vm221_vm1, %v220_v4, %v218_v8 }
  0xa4   :  { %v150_v49 = vpop.xlane.xlu0 %149  ;;  %v267_v22 = vperm.slane %v166_v48, %v521_v30 }
  0xa5   :  { %v251_v3 = vperm.slane %v150_v49, %v518_v9 }
  0xa7   :  { %v252_v34 = vsel %vm209_vm13, %v251_v3, %v250_v20 }
  0xa9   :  { %v152_v50 = vpop.xlane.xlu1 %151 }
  0xaa   :  { %v253_v25 = vperm.slane %v152_v50, %v211_v61 }
  0xab   :  { %v529_v52 = vpop.xlane.xlu2 %167 }
  0xac   :  { %v136_v53 = vpop.xlane.xlu0 %135  ;;  %v269_v31 = vperm.slane %v529_v52, %v518_v9  ;;  %v254_v36 = vsel %vm213_vm15, %v253_v25, %v252_v34 }
  0xad   :  { %v237_v24 = vperm.slane %v136_v53, %v215_v1 }
  0xb1   :  { %v184_v54 = vpop.xlane.xlu1 %183 }
  0xb2   :  { %v285_v13 = vperm.slane %v184_v54, %v521_v30  ;;  %v238_v30 = vsel %vm217_vm0, %v237_v24, %v236_v19 }
  0xb3   :  { %v138_v55 = vpop.xlane.xlu2 %137 }
  0xb4   :  { %v182_v56 = vpop.xlane.xlu0 %181  ;;  %v239_v26 = vperm.slane %v138_v55, %v538_v2 }
  0xb5   :  { %v284_v11 = vperm.slane %v182_v56, %v515_v29  ;;  %v268_v29 = vsel %vm205_vm12, %v267_v22, %v266_v23 }
  0xb6   :  { %v270_v44 = vsel %vm209_vm13, %v269_v31, %v268_v29 }
  0xb7   :  { %v286_v37 = vsel %vm205_vm12, %v285_v13, %v284_v11 }
  0xb9   :  { %v170_v59 = vpop.xlane.xlu1 %169 }
  0xba   :  { %v271_v35 = vperm.slane %v170_v59, %v211_v61 }
  0xbb   :  { %v186_v60 = vpop.xlane.xlu2 %185 }
  0xbc   :  { %v154_v63 = vpop.xlane.xlu0 %153  ;;  %v287_v27 = vperm.slane %v186_v60, %v518_v9  ;;  %v240_v9 = vsel %vm221_vm1, %v239_v26, %v238_v30  ;;  %v272_v49 = vsel %vm213_vm15, %v271_v35, %v270_v44 }
  0xbd   :  { %v255_v28 = vperm.slane %v154_v63, %v215_v1  ;;  %v297_v52 = vsel %vm296_vm2, %v222_v12, %v240_v9 }
  0xbe   :  { %v288_v40 = vsel %vm209_vm13, %v287_v27, %v286_v37 }
  0xbf   :  { %v256_v41 = vsel %vm217_vm0, %v255_v28, %v254_v36 }
  0xc1   :  { %v172_v16 = vpop.xlane.xlu1 %171 }
  0xc2   :  { %v273_v38 = vperm.slane %v172_v16, %v215_v1 }
  0xc3   :  { %v188_v18 = vpop.xlane.xlu2 %187 }
  0xc4   :  { %v156_v21 = vpop.xlane.xlu0 %155  ;;  %v289_v32 = vperm.slane %v188_v18, %v211_v61  ;;  %v274_v53 = vsel %vm217_vm0, %v273_v38, %v272_v49 }
  0xc5   :  { %v257_v33 = vperm.slane %v156_v21, %v538_v2 }
  0xc6   :  { %v290_v45 = vsel %vm213_vm15, %v289_v32, %v288_v40 }
  0xc7   :  { %v258_v46 = vsel %vm221_vm1, %v257_v33, %v256_v41 }
  0xc8   :  { %v299_v55 = vsel %vm298_vm3, %v297_v52, %v258_v46 }
  0xc9   :  { %v190_v39 = vpop.xlane.xlu1 %189 }
  0xca   :  { %v291_v42 = vperm.slane %v190_v39, %v215_v1 }
  0xcb   :  { %v192_v43 = vpop.xlane.xlu2 %191 }
  0xcc   :  { %v174_v47 = vpop.xlane.xlu0 %173  ;;  %v293_v48 = vperm.slane %v192_v43, %v538_v2  ;;  %v292_v51 = vsel %vm217_vm0, %v291_v42, %v290_v45 }
  0xcd   :  { %v275_v50 = vperm.slane %v174_v47, %v538_v2 }
  0xce   :  { %v294_v54 = vsel %vm221_vm1, %v293_v48, %v292_v51 }
  0xcf   :  { %v276_v56 = vsel %vm221_vm1, %v275_v50, %v274_v53 }
  0xd0   :  { %v301_v58 = vsel %vm300_vm4, %v299_v55, %v276_v56 }
  0xd1   :  { %v303_v59 = vsel %vm302_vm5, %v301_v58, %v294_v54 }
  0xd2   :  { %v304_v60 = vadd.f32 %v303_v59, %v193_v57 }
  0xd4   :  { %306 = vst.msk [vmem:[#allocation2] sm:$0x1f] %vm29_vm14, %v304_v60 }
  0xdb   :  { %v310_v61 = vld [vmem:[#allocation2] sm:$0x1f] }
  0xdc   :  { %v311_v62 = vmul.f32 0.0078125, %v310_v61 }
  0xde   :  { %312 = vst.msk [vmem:[#allocation6] sm:$0x1f] %vm29_vm14, %v311_v62 }
  0xdf   :  { %323 = dma.vmem_to_hbm [thread:$0]  %s319_s13, 128, %s321_s16, [#allocation5]  }
  0xe0   :  { %397 = dma.done.wait [#allocation5], 128  }
  0xe1   :  { %398 = vsyncadd [#allocation5], 4294967168 }
  0xe2   :  { %328 = vsyncpa [#allocation4], 1 }
  0xe3   :  { %329 = vsyncpa [#allocation5], 1 }

</bundles_post_ra>
